<compile_context>
chip_gen: v6e
topology: v6e:2x2x1
jax: 0.10.0
libtpu: 0.0.40
codegen_flags: <defaults>
</compile_context>

<pallas_src>
import jax
import jax.numpy as jnp
from jax.experimental import pallas as pl
from jax.experimental.pallas import tpu as pltpu

H1 = 1024
H2 = 256
MAX_TB = 1024      # per-tile batch cap: ~9 MiB resident VMEM -> safe on v5e/v6e/v7x
MIN_TB = 16        # bf16 packs 16 rows per vreg sublane group
MIN_SPLIT = 512    # only force a >=2-step grid (dual-TC on v7x) above this batch


def critic_kernel(x_ref, w1_ref, b1_ref, w2_ref, b2_ref, w3_ref, b3_ref, o_ref):
    # fc1 (+ fused concat, done in wrapper) + ReLU.  bf16 MXU inputs, fp32 acc.
    h1 = (jnp.dot(x_ref[...], w1_ref[...], preferred_element_type=jnp.float32)
          + b1_ref[...])
    h1 = jnp.maximum(h1, 0.0).astype(jnp.bfloat16)

    # fc2 + ReLU
    h2 = (jnp.dot(h1, w2_ref[...], preferred_element_type=jnp.float32)
          + b2_ref[...])
    h2 = jnp.maximum(h2, 0.0)

    # fc3: output width 1 -> VPU multiply + lane reduction (no MXU pass).
    q = jnp.sum(h2 * w3_ref[...], axis=-1, keepdims=True) + b3_ref[...]   # (TB, 1)

    # Lane-dense store: (TB,1) column -> (1,1,TB) row (sublane->lane move on the
    # XLU, a free slot while the MXU is busy); unmasked full-lane vst.
    o_ref[...] = q.reshape(1, 1, -1).astype(o_ref.dtype)


def init_critic_params(state_size, action_size, key):
    """Deterministic init mimicking nn.Linear's U(-1/sqrt(fan_in), 1/sqrt(fan_in))."""
    in1 = state_size + action_size * 3
    dims = [(in1, H1), (H1, H2), (H2, 1)]
    params = {}
    keys = jax.random.split(key, 2 * len(dims))
    for li, (fan_in, fan_out) in enumerate(dims):
        bound = 1.0 / jnp.sqrt(jnp.float32(fan_in))
        w = jax.random.uniform(keys[2 * li], (fan_in, fan_out),
                               minval=-bound, maxval=bound, dtype=jnp.float32)
        b = jax.random.uniform(keys[2 * li + 1], (1, fan_out),
                               minval=-bound, maxval=bound, dtype=jnp.float32)
        params[f"w{li + 1}"] = w
        params[f"b{li + 1}"] = b
    return params


def prepare_kernel_params(params):
    """One-time dtype/layout prep (NOT per forward call)."""
    return (params["w1"].astype(jnp.bfloat16),          # (K1, 1024) bf16
            params["b1"].astype(jnp.float32),            # (1, 1024)
            params["w2"].astype(jnp.bfloat16),            # (1024, 256) bf16
            params["b2"].astype(jnp.float32),             # (1, 256)
            params["w3"].T.astype(jnp.float32),           # (1, 256) row for VPU fc3
            params["b3"].astype(jnp.float32))             # (1, 1)


def _round_up(n, m):
    return (n + m - 1) // m * m


def _cdiv(a, b):
    return -(-a // b)


@jax.jit
def critic_forward(state, action, kparams):
    w1, b1, w2, b2, w3, b3 = kparams
    B = state.shape[0]
    K1 = w1.shape[0]

    # Fold the concat here so fc1 is a single matmul inside the kernel.
    x = jnp.concatenate([state, action], axis=1).astype(jnp.bfloat16)

    # Padding-aware, dual-TC-aware tile selection.
    num_tiles = _cdiv(B, MAX_TB)
    if num_tiles == 1 and B >= MIN_SPLIT:
        num_tiles = 2                       # let v7x's 2 TensorCores both work
    if num_tiles > 1 and num_tiles % 2:
        num_tiles += 1                      # even step count balances the 2 TCs
    TB = _round_up(_cdiv(B, num_tiles), MIN_TB)
    B_pad = TB * num_tiles
    if B_pad != B:
        x = jnp.pad(x, ((0, B_pad - B), (0, 0)))

    grid = (num_tiles,)

    # Cost estimate with MXU-padded K: fc1's tiny K still burns full K-passes,
    # so it costs about as much MXU time as fc2 despite far fewer raw FLOPs.
    K1_mxu = _round_up(K1, 128)
    flops = 2 * B_pad * (K1_mxu * H1 + H1 * H2) + 2 * B_pad * H2
    bytes_accessed = (w1.size * 2 + w2.size * 2
                      + 4 * (b1.size + b2.size + w3.size + b3.size)
                      + B_pad * (K1 * 2 + 4))

    out = pl.pallas_call(
        critic_kernel,
        out_shape=jax.ShapeDtypeStruct((num_tiles, 1, TB), jnp.float32),
        grid=grid,
        in_specs=[
            pl.BlockSpec((TB, K1), lambda i: (i, 0)),    # batch-tiled input
            pl.BlockSpec((K1, H1), lambda i: (0, 0)),    # weights: VMEM-resident
            pl.BlockSpec((1, H1), lambda i: (0, 0)),
            pl.BlockSpec((H1, H2), lambda i: (0, 0)),
            pl.BlockSpec((1, H2), lambda i: (0, 0)),
            pl.BlockSpec((1, H2), lambda i: (0, 0)),
            pl.BlockSpec((1, 1), lambda i: (0, 0)),
        ],
        # Lane-dense output: one (1,1,TB) row per grid step.
        out_specs=pl.BlockSpec((1, 1, TB), lambda i: (i, 0, 0)),
        compiler_params=pltpu.CompilerParams(
            dimension_semantics=("parallel",),
            vmem_limit_bytes=32 * 1024 * 1024),
        cost_estimate=pl.CostEstimate(flops=int(flops), transcendentals=0,
                                      bytes_accessed=int(bytes_accessed)),
    )(x, w1, b1, w2, b2, w3, b3)

    # (num_tiles, 1, TB) -> (B, 1), dropping batch padding.
    return out.reshape(B_pad, 1)[:B]


if __name__ == "__main__":
    state_size = 8
    action_size = 4          # action tensor carries action_size * 3 features
    batch = 2

    key = jax.random.PRNGKey(0)
    k_state, k_action, k_params = jax.random.split(key, 3)

    state = jax.random.normal(k_state, (batch, state_size), dtype=jnp.float32)
    action = jax.random.normal(k_action, (batch, action_size * 3), dtype=jnp.float32)

    params = init_critic_params(state_size, action_size, k_params)
    kparams = prepare_kernel_params(params)

    out = critic_forward(state, action, kparams)
    out = jax.block_until_ready(out)

    # Pure-JAX reference replicating the same dtype flow (bf16 MXU inputs, fp32 acc).
    w1, b1, w2, b2, w3, b3 = kparams
    x = jnp.concatenate([state, action], axis=1).astype(jnp.bfloat16)
    h1 = jnp.maximum(jnp.dot(x, w1, preferred_element_type=jnp.float32) + b1,
                     0.0).astype(jnp.bfloat16)
    h2 = jnp.maximum(jnp.dot(h1, w2, preferred_element_type=jnp.float32) + b2, 0.0)
    ref = jnp.sum(h2 * w3, axis=-1, keepdims=True) + b3

    assert out.shape == (batch, 1)
    assert jnp.allclose(out, ref, atol=2e-3, rtol=2e-3)

    print("KERNEL_OK")
</pallas_src>

<mosaic_0001>
module attributes {stable_mosaic.version = 11 : i64} {
  func.func @critic_kernel(%arg0: i32, %arg1: memref<16x20xbf16, #tpu.memory_space<vmem>>, %arg2: memref<20x1024xbf16, #tpu.memory_space<vmem>>, %arg3: memref<1x1024xf32, #tpu.memory_space<vmem>>, %arg4: memref<1024x256xbf16, #tpu.memory_space<vmem>>, %arg5: memref<1x256xf32, #tpu.memory_space<vmem>>, %arg6: memref<1x256xf32, #tpu.memory_space<vmem>>, %arg7: memref<1x1xf32, #tpu.memory_space<vmem>>, %arg8: memref<1x1x16xf32, #tpu.memory_space<vmem>>) attributes {dimension_semantics = [#tpu.dimension_semantics<parallel>], iteration_bounds = array<i64: 1>, scalar_prefetch = 0 : i64, scratch_operands = 0 : i64, tpu.core_type = #tpu.core_type<tc>, window_params = [{transform_indices = @transform_0, window_bounds = array<i64: 16, 20>}, {pipeline_mode = #tpu.pipeline_mode<synchronous>, transform_indices = @transform_1, window_bounds = array<i64: 20, 1024>}, {pipeline_mode = #tpu.pipeline_mode<synchronous>, transform_indices = @transform_2, window_bounds = array<i64: 1, 1024>}, {pipeline_mode = #tpu.pipeline_mode<synchronous>, transform_indices = @transform_3, window_bounds = array<i64: 1024, 256>}, {pipeline_mode = #tpu.pipeline_mode<synchronous>, transform_indices = @transform_4, window_bounds = array<i64: 1, 256>}, {pipeline_mode = #tpu.pipeline_mode<synchronous>, transform_indices = @transform_5, window_bounds = array<i64: 1, 256>}, {pipeline_mode = #tpu.pipeline_mode<synchronous>, transform_indices = @transform_6, window_bounds = array<i64: 1, 1>}, {transform_indices = @transform_7, window_bounds = array<i64: 1, 1, 16>}]} {
    %c0 = arith.constant 0 : index
    %c0_0 = arith.constant 0 : index
    %0 = vector.load %arg1[%c0, %c0_0] : memref<16x20xbf16, #tpu.memory_space<vmem>>, vector<16x20xbf16>
    %c0_1 = arith.constant 0 : index
    %c0_2 = arith.constant 0 : index
    %1 = vector.load %arg2[%c0_1, %c0_2] : memref<20x1024xbf16, #tpu.memory_space<vmem>>, vector<20x1024xbf16>
    %cst = arith.constant dense<0.000000e+00> : vector<16x1024xf32>
    %2 = tpu.matmul %0, %1, %cst {dimension_numbers = #tpu.dot_dimension_numbers<[1], [0], [0], [1], [0, 0, 1, 1], [], []>} : vector<16x20xbf16>, vector<20x1024xbf16>, vector<16x1024xf32> -> vector<16x1024xf32>
    %c0_3 = arith.constant 0 : index
    %c0_4 = arith.constant 0 : index
    %3 = vector.load %arg3[%c0_3, %c0_4] : memref<1x1024xf32, #tpu.memory_space<vmem>>, vector<1x1024xf32>
    %4 = vector.broadcast %3 : vector<1x1024xf32> to vector<16x1024xf32>
    %5 = arith.addf %2, %4 : vector<16x1024xf32>
    %cst_5 = arith.constant 0.000000e+00 : f32
    %6 = vector.broadcast %cst_5 : f32 to vector<16x1024xf32>
    %7 = arith.maximumf %5, %6 : vector<16x1024xf32>
    %8 = arith.truncf %7 : vector<16x1024xf32> to vector<16x1024xbf16>
    %c0_6 = arith.constant 0 : index
    %c0_7 = arith.constant 0 : index
    %9 = vector.load %arg4[%c0_6, %c0_7] : memref<1024x256xbf16, #tpu.memory_space<vmem>>, vector<1024x256xbf16>
    %cst_8 = arith.constant dense<0.000000e+00> : vector<16x256xf32>
    %10 = tpu.matmul %8, %9, %cst_8 {dimension_numbers = #tpu.dot_dimension_numbers<[1], [0], [0], [1], [0, 0, 1, 1], [], []>} : vector<16x1024xbf16>, vector<1024x256xbf16>, vector<16x256xf32> -> vector<16x256xf32>
    %c0_9 = arith.constant 0 : index
    %c0_10 = arith.constant 0 : index
    %11 = vector.load %arg5[%c0_9, %c0_10] : memref<1x256xf32, #tpu.memory_space<vmem>>, vector<1x256xf32>
    %12 = vector.broadcast %11 : vector<1x256xf32> to vector<16x256xf32>
    %13 = arith.addf %10, %12 : vector<16x256xf32>
    %cst_11 = arith.constant 0.000000e+00 : f32
    %14 = vector.broadcast %cst_11 : f32 to vector<16x256xf32>
    %15 = arith.maximumf %13, %14 : vector<16x256xf32>
    %c0_12 = arith.constant 0 : index
    %c0_13 = arith.constant 0 : index
    %16 = vector.load %arg6[%c0_12, %c0_13] : memref<1x256xf32, #tpu.memory_space<vmem>>, vector<1x256xf32>
    %17 = vector.broadcast %16 : vector<1x256xf32> to vector<16x256xf32>
    %18 = arith.mulf %15, %17 : vector<16x256xf32>
    %cst_14 = arith.constant dense<0.000000e+00> : vector<16xf32>
    %19 = vector.multi_reduction <add>, %18, %cst_14 [1] : vector<16x256xf32> to vector<16xf32>
    %20 = vector.shape_cast %19 : vector<16xf32> to vector<16x1xf32>
    %c0_15 = arith.constant 0 : index
    %c0_16 = arith.constant 0 : index
    %21 = vector.load %arg7[%c0_15, %c0_16] : memref<1x1xf32, #tpu.memory_space<vmem>>, vector<1x1xf32>
    %22 = vector.broadcast %21 : vector<1x1xf32> to vector<16x1xf32>
    %23 = arith.addf %20, %22 : vector<16x1xf32>
    %24 = vector.shape_cast %23 : vector<16x1xf32> to vector<1x1x16xf32>
    %c0_17 = arith.constant 0 : index
    %c0_18 = arith.constant 0 : index
    %c0_19 = arith.constant 0 : index
    %25 = vector.load %arg8[%c0_17, %c0_18, %c0_19] : memref<1x1x16xf32, #tpu.memory_space<vmem>>, vector<1x1x16xf32>
    tpu.vector_store %arg8[%c0_17, %c0_18, %c0_19], %24 {strides = array<i32>} : memref<1x1x16xf32, #tpu.memory_space<vmem>>, vector<1x1x16xf32>,
    return
  }
  func.func @transform_0(%arg0: i32) -> (i32, i32) {
    %c0_i32 = arith.constant 0 : i32
    %c0_i32_0 = arith.constant 0 : i32
    return %arg0, %c0_i32 : i32, i32
  }
  func.func @transform_1(%arg0: i32) -> (i32, i32) {
    %c0_i32 = arith.constant 0 : i32
    %c0_i32_0 = arith.constant 0 : i32
    %c0_i32_1 = arith.constant 0 : i32
    return %c0_i32, %c0_i32_0 : i32, i32
  }
  func.func @transform_2(%arg0: i32) -> (i32, i32) {
    %c0_i32 = arith.constant 0 : i32
    %c0_i32_0 = arith.constant 0 : i32
    %c0_i32_1 = arith.constant 0 : i32
    return %c0_i32, %c0_i32_0 : i32, i32
  }
  func.func @transform_3(%arg0: i32) -> (i32, i32) {
    %c0_i32 = arith.constant 0 : i32
    %c0_i32_0 = arith.constant 0 : i32
    %c0_i32_1 = arith.constant 0 : i32
    return %c0_i32, %c0_i32_0 : i32, i32
  }
  func.func @transform_4(%arg0: i32) -> (i32, i32) {
    %c0_i32 = arith.constant 0 : i32
    %c0_i32_0 = arith.constant 0 : i32
    %c0_i32_1 = arith.constant 0 : i32
    return %c0_i32, %c0_i32_0 : i32, i32
  }
  func.func @transform_5(%arg0: i32) -> (i32, i32) {
    %c0_i32 = arith.constant 0 : i32
    %c0_i32_0 = arith.constant 0 : i32
    %c0_i32_1 = arith.constant 0 : i32
    return %c0_i32, %c0_i32_0 : i32, i32
  }
  func.func @transform_6(%arg0: i32) -> (i32, i32) {
    %c0_i32 = arith.constant 0 : i32
    %c0_i32_0 = arith.constant 0 : i32
    %c0_i32_1 = arith.constant 0 : i32
    return %c0_i32, %c0_i32_0 : i32, i32
  }
  func.func @transform_7(%arg0: i32) -> (i32, i32, i32) {
    %c0_i32 = arith.constant 0 : i32
    %c0_i32_0 = arith.constant 0 : i32
    %c0_i32_1 = arith.constant 0 : i32
    return %arg0, %c0_i32, %c0_i32_0 : i32, i32, i32
  }
}

</mosaic_0001>

<bundles_post_ra>
// kernel: critic_forward.1
= control target key start
LH: loop header
LB: loop body
LE: loop exit
PB: predicated region body
PF: predicated region fallthrough
CT: control target
= control target key end

     0   :  { %s1957_s0 = inlined_call_operand.vmem [shape: bf16[16,20], index: 0, kind: input, shape index: {}]   ;;  %s1958_s1 = inlined_call_operand.hbm [shape: bf16[20,1024], index: 1, kind: input, shape index: {}]   ;;  %s1959_s2 = inlined_call_operand.vmem [shape: f32[1,1024], index: 2, kind: input, shape index: {}]   ;;  %s1960_s3 = inlined_call_operand.hbm [shape: bf16[1024,256], index: 3, kind: input, shape index: {}]   ;;  %s1961_s4 = inlined_call_operand.vmem [shape: f32[1,256], index: 4, kind: input, shape index: {}]   ;;  %s1962_s5 = inlined_call_operand.vmem [shape: f32[1,256], index: 5, kind: input, shape index: {}]   ;;  %s1963_s6 = inlined_call_operand.<no memory space> [shape: f32[1,1], index: 6, kind: input, shape index: {}]   ;;  %s1964_s7 = inlined_call_operand.vmem [shape: f32[1,1,16], index: 7, kind: output, shape index: {}]  }
   0x1   :  { %v12_v0 = vstv %s1963_s6 }
   0x2   :  { %13 = vst [vmem:[#allocation2] sm:$0x1] %v12_v0 }
   0x3   :  { %14 = vsyncpa [#allocation4], 0 }
   0x4   :  { %15 = vsyncpa [#allocation6], 0  ;;  %s1828_s26 = smov [#allocation3]  }
   0x5   :  { %s23_s27 = sshll.u32 %s1828_s26, 4  ;;  %s24_s27 = int_to_ptr.vmem [resolvable:$true] %s23_s27 }
   0x6   :  { %s1792_s28 = scalar_lea.vmem %s24_s27, 1536  ;;  %p1797_p1 = scmp.lt.s32.totalorder %s24_s27, %s24_s27 }
   0x7   :  { %p1793_p0 = scmp.ne.s32.totalorder %s24_s27, %s1792_s28  ;;  %p1798_p2 = scmp.lt.s32.totalorder %s1792_s28, %s1792_s28 }
   0x9   :  { %p1799_p3 = por %p1798_p2, %p1797_p1 }
   0xb   :  { %p1800_p4 = pnand %p1799_p3, %p1793_p0 }
   0xd   :  { %1803 = shalt.err (!%p1800_p4)
}
   0xe   :  { %s1829_s29 = smov 512   ;;  %s1830_s30 = smov 32  }
   0xf   :  { %29 = dma.hbm_to_vmem [thread:$0]  %s1958_s1, 1536, %s24_s27, [#allocation4], %s1829_s29, %s1829_s29, %s1830_s30  }
  0x10   :  { %s1831_s6 = smov [#allocation5]  }
  0x11   :  { %s37_s10 = sshll.u32 %s1831_s6, 4  ;;  %s38_s10 = int_to_ptr.vmem [resolvable:$true] %s37_s10 }
  0x12   :  { %s1812_s11 = scalar_lea.vmem %s38_s10, 16384  ;;  %p1817_p6 = scmp.lt.s32.totalorder %s38_s10, %s38_s10 }
  0x13   :  { %p1813_p5 = scmp.ne.s32.totalorder %s38_s10, %s1812_s11  ;;  %p1818_p7 = scmp.lt.s32.totalorder %s1812_s11, %s1812_s11 }
  0x15   :  { %p1819_p8 = por %p1818_p7, %p1817_p6 }
  0x17   :  { %p1820_p9 = pnand %p1819_p8, %p1813_p5 }
  0x19   :  { %1823 = shalt.err (!%p1820_p9)
}
  0x1a   :  { %s1832_s12 = smov 128   ;;  %s1833_s13 = smov 8  }
  0x1b   :  { %43 = dma.hbm_to_vmem [thread:$0]  %s1960_s3, 16384, %s38_s10, [#allocation6], %s1832_s12, %s1832_s12, %s1833_s13  }
  0x1c   :  { %1824 = dma.done.wait [#allocation4], 1536  }
  0x1d   :  { %1825 = vsyncadd [#allocation4], 4294965760 }
  0x1e   :  { %1826 = dma.done.wait [#allocation6], 16384  }
  0x1f   :  { %1827 = vsyncadd [#allocation6], 4294950912  ;;  %v1834_v1 = vmov 0   ;;  %v67_v2 = vld [vmem:[#allocation3 + $0x40] sm:$0x33]  ;;  %vm182_vm0 = vcmask 1041408  }
  0x20   :  { %239 = vmatprep.mubr.bf16.mxu0 %v1834_v1  ;;  %282 = vmatprep.mubr.bf16.mxu1 %v1834_v1  ;;  %v68_v3 = vld [vmem:[#allocation3 + $0x48] sm:$0x33]  ;;  %v59_v4 = vld [vmem:[#allocation3] sm:$0xff]  ;;  %v1430_v5 = vcombine.high %v67_v2, %v67_v2  ;;  %v1429_v7 = vcombine.low %v67_v2, %v67_v2  ;;  %v69_v16 = vld [vmem:[#allocation3 + $0x50] sm:$0x33]  ;;  %vm178_vm1 = vcmask 162816  }
  0x21   :  { %1581 = vset.pattern.permute.xlu1 %v1834_v1  ;;  %1582 = vset.pattern.permute.xlu0 %v1834_v1  ;;  %v1432_v6 = vcombine.high %v68_v3, %v68_v3  ;;  %v1431_v8 = vcombine.low %v68_v3, %v68_v3  ;;  %v63_v9 = vld [vmem:[#allocation3 + $0x20] sm:$0xff]  ;;  %v60_v10 = vld [vmem:[#allocation3 + $0x8] sm:$0xff]  ;;  %v70_v17 = vld [vmem:[#allocation3 + $0x58] sm:$0x33]  ;;  %v1434_v20 = vcombine.high %v69_v16, %v69_v16  ;;  %vm1409_vm2 = vcmask 130112  }
  0x22   :  { %v64_v11 = vld [vmem:[#allocation3 + $0x28] sm:$0xff]  ;;  %v1422_v12 = vcombine.high %v59_v4, %v63_v9  ;;  %1437 = vmatprep.subr.msk.bf16.mxu0 %vm182_vm0, %v1430_v5  ;;  %v184_v14 = vsel %vm182_vm0, %v1429_v7, 0  ;;  %v1421_v18 = vcombine.low %v59_v4, %v63_v9  ;;  %v61_v21 = vld [vmem:[#allocation3 + $0x10] sm:$0xff]  ;;  %v1433_v22 = vcombine.low %v69_v16, %v69_v16  ;;  %v62_v26 = vld [vmem:[#allocation3 + $0x18] sm:$0xff] }
  0x23   :  { %v1424_v13 = vcombine.high %v60_v10, %v64_v11  ;;  %1439 = vmatprep.subr.msk.bf16.mxu1 %vm182_vm0, %v1432_v6  ;;  %v190_v15 = vsel %vm182_vm0, %v1431_v8, 0  ;;  %220 = vmatpush1.bf16.msra.mxu0 %v184_v14  ;;  %v1423_v19 = vcombine.low %v60_v10, %v64_v11  ;;  %v1436_v23 = vcombine.high %v70_v17, %v70_v17  ;;  %v65_v25 = vld [vmem:[#allocation3 + $0x30] sm:$0xff]  ;;  %v66_v27 = vld [vmem:[#allocation3 + $0x38] sm:$0xff]  ;;  %v1600_v39 = vld [vmem:[#allocation5 + $0x64] ss:$8 sps:$4 sm:$0xff]  }
  0x24   :  { %263 = vmatpush1.bf16.msra.mxu1 %v190_v15  ;;  %221 = vmatprep.subr.bf16.mxu0 %v1422_v12  ;;  %v1435_v24 = vcombine.low %v70_v17, %v70_v17  ;;  %v1587_v28 = vld [vmem:[%s1957_s0] sm:$0xff]   ;;  %v196_v29 = vsel %vm182_vm0, %v1433_v22, 0  ;;  %v1426_v31 = vcombine.high %v61_v21, %v65_v25  ;;  %v1428_v32 = vcombine.high %v62_v26, %v66_v27  ;;  %v1592_v37 = vld [vmem:[#allocation5 + $0x70] ss:$8 sps:$4 sm:$0xff]  }
  0x25   :  { %264 = vmatprep.subr.bf16.mxu1 %v1424_v13  ;;  %v1425_v33 = vcombine.low %v61_v21, %v65_v25  ;;  %v1427_v34 = vcombine.low %v62_v26, %v66_v27  ;;  %v1594_v35 = vld [vmem:[#allocation5 + $0x74] ss:$8 sps:$4 sm:$0xff]   ;;  %v1595_v38 = vld [vmem:[#allocation5 + $0x170] ss:$8 sps:$4 sm:$0xff]   ;;  %v1603_v40 = vld [vmem:[#allocation5 + $0x164] ss:$8 sps:$4 sm:$0xff]  }
  0x26   :  { %v202_v30 = vsel %vm182_vm0, %v1435_v24, 0  ;;  %v1597_v36 = vld [vmem:[#allocation5 + $0x174] ss:$8 sps:$4 sm:$0xff]   ;;  %v1598_v41 = vld [vmem:[#allocation5 + $0x60] ss:$8 sps:$4 sm:$0xff]   ;;  %vm1412_vm3 = vcmask 122880  }
  0x27   :  { %222 = vmatpush1.bf16.msra.mxu0 %v1421_v18  ;;  %v1601_v42 = vld [vmem:[#allocation5 + $0x160] ss:$8 sps:$4 sm:$0xff]   ;;  %v1606_v43 = vld [vmem:[#allocation5 + $0x54] ss:$8 sps:$4 sm:$0xff]   ;;  %v1604_v45 = vld [vmem:[#allocation5 + $0x50] ss:$8 sps:$4 sm:$0xff]  }
  0x28   :  { %265 = vmatpush1.bf16.msra.mxu1 %v1423_v19  ;;  %1441 = vmatprep.subr.msk.bf16.mxu0 %vm182_vm0, %v1434_v20  ;;  %v1609_v44 = vld [vmem:[#allocation5 + $0x154] ss:$8 sps:$4 sm:$0xff]   ;;  %v1607_v46 = vld [vmem:[#allocation5 + $0x150] ss:$8 sps:$4 sm:$0xff]   ;;  %v1612_v47 = vld [vmem:[#allocation5 + $0x44] ss:$8 sps:$4 sm:$0xff]  }
  0x29   :  { %1443 = vmatprep.subr.msk.bf16.mxu1 %vm182_vm0, %v1436_v23  ;;  %v1615_v48 = vld [vmem:[#allocation5 + $0x144] ss:$8 sps:$4 sm:$0xff]   ;;  %v1610_v49 = vld [vmem:[#allocation5 + $0x40] ss:$8 sps:$4 sm:$0xff]   ;;  %v1618_v51 = vld [vmem:[#allocation5 + $0x34] ss:$8 sps:$4 sm:$0xff]  }
  0x2a   :  { %1438 = vmatmul.mubr.msk.bf16.vlgmr.msra.gmra.mxu0 %vm178_vm1, %v1587_v28  ;;  %v1613_v50 = vld [vmem:[#allocation5 + $0x140] ss:$8 sps:$4 sm:$0xff]   ;;  %v1621_v52 = vld [vmem:[#allocation5 + $0x134] ss:$8 sps:$4 sm:$0xff]   ;;  %v1616_v53 = vld [vmem:[#allocation5 + $0x30] ss:$8 sps:$4 sm:$0xff]  }
  0x2b   :  { %1440 = vmatmul.mubr.msk.bf16.vlgmr.msra.gmra.mxu1 %vm178_vm1, %v1587_v28  ;;  %306 = vmatpush1.bf16.msra.mxu0 %v196_v29  ;;  %v1619_v54 = vld [vmem:[#allocation5 + $0x130] ss:$8 sps:$4 sm:$0xff]   ;;  %v1624_v55 = vld [vmem:[#allocation5 + $0x24] ss:$8 sps:$4 sm:$0xff]   ;;  %v1622_v57 = vld [vmem:[#allocation5 + $0x20] ss:$8 sps:$4 sm:$0xff]  }
  0x2c   :  { %349 = vmatpush1.bf16.msra.mxu1 %v202_v30  ;;  %307 = vmatprep.subr.bf16.mxu0 %v1426_v31  ;;  %v1627_v56 = vld [vmem:[#allocation5 + $0x124] ss:$8 sps:$4 sm:$0xff]   ;;  %v1625_v58 = vld [vmem:[#allocation5 + $0x120] ss:$8 sps:$4 sm:$0xff]   ;;  %v1630_v59 = vld [vmem:[#allocation5 + $0x14] ss:$8 sps:$4 sm:$0xff]  }
  0x2d   :  { %350 = vmatprep.subr.bf16.mxu1 %v1428_v32  ;;  %325 = vmatprep.mubr.bf16.mxu0 %v1834_v1  ;;  %v1633_v60 = vld [vmem:[#allocation5 + $0x114] ss:$8 sps:$4 sm:$0xff]   ;;  %v1628_v61 = vld [vmem:[#allocation5 + $0x10] ss:$8 sps:$4 sm:$0xff]   ;;  %v1636_v63 = vld [vmem:[#allocation5 + $0x4] ss:$8 sps:$4 sm:$0xff]  }
  0x2e   :  { %368 = vmatprep.mubr.bf16.mxu1 %v1834_v1  ;;  %v1631_v62 = vld [vmem:[#allocation5 + $0x110] ss:$8 sps:$4 sm:$0xff]   ;;  %v1639_v0 = vld [vmem:[#allocation5 + $0x104] ss:$8 sps:$4 sm:$0xff]   ;;  %v1634_v1 = vld [vmem:[#allocation5] ss:$8 sps:$4 sm:$0xff]  }
  0x2f   :  { %308 = vmatpush1.bf16.msra.mxu0 %v1425_v33  ;;  %v1637_v2 = vld [vmem:[#allocation5 + $0x100] ss:$8 sps:$4 sm:$0xff]   ;;  %v1642_v3 = vld [vmem:[#allocation5 + $0xf4] ss:$8 sps:$4 sm:$0xff]   ;;  %v1640_v5 = vld [vmem:[#allocation5 + $0xf0] ss:$8 sps:$4 sm:$0xff]  }
  0x30   :  { %351 = vmatpush1.bf16.msra.mxu1 %v1427_v34  ;;  %1183 = vmatprep.subr.bf16.mxu0 %v1594_v35  ;;  %v1645_v4 = vld [vmem:[#allocation5 + $0x1f4] ss:$8 sps:$4 sm:$0xff]   ;;  %v1643_v6 = vld [vmem:[#allocation5 + $0x1f0] ss:$8 sps:$4 sm:$0xff]   ;;  %v1648_v7 = vld [vmem:[#allocation5 + $0xe4] ss:$8 sps:$4 sm:$0xff]  }
  0x31   :  { %1226 = vmatprep.subr.bf16.mxu1 %v1597_v36  ;;  %v1651_v8 = vld [vmem:[#allocation5 + $0x1e4] ss:$8 sps:$4 sm:$0xff]   ;;  %v1646_v9 = vld [vmem:[#allocation5 + $0xe0] ss:$8 sps:$4 sm:$0xff]   ;;  %v1654_v11 = vld [vmem:[#allocation5 + $0xd4] ss:$8 sps:$4 sm:$0xff]  }
  0x32   :  { %1442 = vmatmul.mubr.msk.bf16.vlgmr.msra.gmra.mxu0 %vm178_vm1, %v1587_v28  ;;  %v1649_v10 = vld [vmem:[#allocation5 + $0x1e0] ss:$8 sps:$4 sm:$0xff]   ;;  %v1657_v12 = vld [vmem:[#allocation5 + $0x1d4] ss:$8 sps:$4 sm:$0xff]   ;;  %v1652_v13 = vld [vmem:[#allocation5 + $0xd0] ss:$8 sps:$4 sm:$0xff]  }
  0x33   :  { %1444 = vmatmul.mubr.msk.bf16.vlgmr.msra.gmra.mxu1 %vm178_vm1, %v1587_v28  ;;  %1184 = vmatpush1.bf16.msra.mxu0 %v1592_v37  ;;  %v1655_v14 = vld [vmem:[#allocation5 + $0x1d0] ss:$8 sps:$4 sm:$0xff]   ;;  %v1660_v15 = vld [vmem:[#allocation5 + $0xc4] ss:$8 sps:$4 sm:$0xff]   ;;  %v1658_v17 = vld [vmem:[#allocation5 + $0xc0] ss:$8 sps:$4 sm:$0xff]   ;;  %v73_v37 = vlaneseq }
  0x34   :  { %1227 = vmatpush1.bf16.msra.mxu1 %v1595_v38  ;;  %1185 = vmatprep.subr.bf16.mxu0 %v1600_v39  ;;  %v1663_v16 = vld [vmem:[#allocation5 + $0x1c4] ss:$8 sps:$4 sm:$0xff]   ;;  %v1661_v18 = vld [vmem:[#allocation5 + $0x1c0] ss:$8 sps:$4 sm:$0xff]   ;;  %v1666_v19 = vld [vmem:[#allocation5 + $0xb4] ss:$8 sps:$4 sm:$0xff]  }
  0x35   :  { %1228 = vmatprep.subr.bf16.mxu1 %v1603_v40  ;;  %v1669_v20 = vld [vmem:[#allocation5 + $0x1b4] ss:$8 sps:$4 sm:$0xff]   ;;  %v1664_v21 = vld [vmem:[#allocation5 + $0xb0] ss:$8 sps:$4 sm:$0xff]   ;;  %v1672_v23 = vld [vmem:[#allocation5 + $0xa4] ss:$8 sps:$4 sm:$0xff]  }
  0x36   :  { %v1667_v22 = vld [vmem:[#allocation5 + $0x1b0] ss:$8 sps:$4 sm:$0xff]   ;;  %v1675_v24 = vld [vmem:[#allocation5 + $0x1a4] ss:$8 sps:$4 sm:$0xff]   ;;  %v1670_v25 = vld [vmem:[#allocation5 + $0xa0] ss:$8 sps:$4 sm:$0xff]  }
  0x37   :  { %1186 = vmatpush1.bf16.msra.mxu0 %v1598_v41  ;;  %v1673_v26 = vld [vmem:[#allocation5 + $0x1a0] ss:$8 sps:$4 sm:$0xff]   ;;  %v1678_v27 = vld [vmem:[#allocation5 + $0x94] ss:$8 sps:$4 sm:$0xff]   ;;  %v1676_v29 = vld [vmem:[#allocation5 + $0x90] ss:$8 sps:$4 sm:$0xff]  }
  0x38   :  { %1229 = vmatpush1.bf16.msra.mxu1 %v1601_v42  ;;  %1187 = vmatprep.subr.bf16.mxu0 %v1606_v43  ;;  %v1681_v28 = vld [vmem:[#allocation5 + $0x194] ss:$8 sps:$4 sm:$0xff]   ;;  %v1679_v30 = vld [vmem:[#allocation5 + $0x190] ss:$8 sps:$4 sm:$0xff]   ;;  %v1684_v31 = vld [vmem:[#allocation5 + $0x84] ss:$8 sps:$4 sm:$0xff]  }
  0x39   :  { %1230 = vmatprep.subr.bf16.mxu1 %v1609_v44  ;;  %v1687_v32 = vld [vmem:[#allocation5 + $0x184] ss:$8 sps:$4 sm:$0xff]   ;;  %v1682_v33 = vld [vmem:[#allocation5 + $0x80] ss:$8 sps:$4 sm:$0xff]   ;;  %v1690_v35 = vld [vmem:[#allocation5 + $0x274] ss:$8 sps:$4 sm:$0xff]  }
  0x3a   :  { %v1685_v34 = vld [vmem:[#allocation5 + $0x180] ss:$8 sps:$4 sm:$0xff]   ;;  %v1693_v36 = vld [vmem:[#allocation5 + $0x374] ss:$8 sps:$4 sm:$0xff]   ;;  %v1900_v38 = vshrl.u32 %v73_v37, 7 }
  0x3b   :  { %1188 = vmatpush1.bf16.msra.mxu0 %v1604_v45  ;;  %v1913_v43 = vld [vmem:[%s1959_s2] sm:$0xff] }
  0x3c   :  { %1231 = vmatpush1.bf16.msra.mxu1 %v1607_v46  ;;  %1189 = vmatprep.subr.bf16.mxu0 %v1612_v47  ;;  %v1903_v39 = vsub.s32 1, %v1900_v38  ;;  %v87_v40 = vsub.s32 3, %v1900_v38  ;;  %v1907_v41 = vsub.s32 0, %v1900_v38  ;;  %v83_v42 = vsub.s32 2, %v1900_v38 }
  0x3d   :  { %1232 = vmatprep.subr.bf16.mxu1 %v1615_v48 }
  0x3e   :  { %v80_v46 = vrot.slane %v1913_v43, %v1903_v39  ;;  %v88_v47 = vrot.slane %v1913_v43, %v87_v40  ;;  %v76_v48 = vrot.slane %v1913_v43, %v1907_v41  ;;  %v1705_v40 = vld [vmem:[#allocation5 + $0x354] ss:$8 sps:$4 sm:$0xff]  }
  0x3f   :  { %1190 = vmatpush1.bf16.msra.mxu0 %v1610_v49  ;;  %v84_v49 = vrot.slane %v1913_v43, %v83_v42 }
  0x40   :  { %1233 = vmatpush1.bf16.msra.mxu1 %v1613_v50  ;;  %1191 = vmatprep.subr.bf16.mxu0 %v1618_v51 }
  0x41   :  { %1234 = vmatprep.subr.bf16.mxu1 %v1621_v52  ;;  %v95_v52 = vsub.s32 5, %v1900_v38 }
  0x43   :  { %1192 = vmatpush1.bf16.msra.mxu0 %v1616_v53  ;;  %v103_v53 = vsub.s32 7, %v1900_v38 }
  0x44   :  { %1235 = vmatpush1.bf16.msra.mxu1 %v1619_v54  ;;  %1193 = vmatprep.subr.bf16.mxu0 %v1624_v55 }
  0x45   :  { %1236 = vmatprep.subr.bf16.mxu1 %v1627_v56 }
  0x47   :  { %1194 = vmatpush1.bf16.msra.mxu0 %v1622_v57 }
  0x48   :  { %1237 = vmatpush1.bf16.msra.mxu1 %v1625_v58  ;;  %1195 = vmatprep.subr.bf16.mxu0 %v1630_v59 }
  0x49   :  { %1238 = vmatprep.subr.bf16.mxu1 %v1633_v60 }
  0x4b   :  { %1196 = vmatpush1.bf16.msra.mxu0 %v1628_v61 }
  0x4c   :  { %1239 = vmatpush1.bf16.msra.mxu1 %v1631_v62  ;;  %1197 = vmatprep.subr.bf16.mxu0 %v1636_v63 }
  0x4d   :  { %1240 = vmatprep.subr.bf16.mxu1 %v1639_v0 }
  0x4f   :  { %1198 = vmatpush1.bf16.msra.mxu0 %v1634_v1 }
  0x50   :  { %1241 = vmatpush1.bf16.msra.mxu1 %v1637_v2  ;;  %1199 = vmatprep.subr.bf16.mxu0 %v1642_v3  ;;  %v96_v2 = vrot.slane %v1913_v43, %v95_v52  ;;  %v104_v3 = vrot.slane %v1913_v43, %v103_v53  ;;  %v1709_v52 = vld [vmem:[#allocation5 + $0x340] ss:$8 sps:$4 sm:$0xff]   ;;  %v1714_v53 = vld [vmem:[#allocation5 + $0x234] ss:$8 sps:$4 sm:$0xff]  }
  0x51   :  { %1242 = vmatprep.subr.bf16.mxu1 %v1645_v4 }
  0x53   :  { %1200 = vmatpush2.bf16.msra.mxu0 %v1640_v5 }
  0x54   :  { %1243 = vmatpush2.bf16.msra.mxu1 %v1643_v6  ;;  %1201 = vmatprep.subr.bf16.mxu0 %v1648_v7 }
  0x55   :  { %1244 = vmatprep.subr.bf16.mxu1 %v1651_v8 }
  0x57   :  { %1202 = vmatpush2.bf16.msra.mxu0 %v1646_v9 }
  0x58   :  { %1245 = vmatpush2.bf16.msra.mxu1 %v1649_v10  ;;  %1203 = vmatprep.subr.bf16.mxu0 %v1654_v11 }
  0x59   :  { %1246 = vmatprep.subr.bf16.mxu1 %v1657_v12 }
  0x5b   :  { %1204 = vmatpush2.bf16.msra.mxu0 %v1652_v13 }
  0x5c   :  { %1247 = vmatpush2.bf16.msra.mxu1 %v1655_v14  ;;  %1205 = vmatprep.subr.bf16.mxu0 %v1660_v15 }
  0x5d   :  { %1248 = vmatprep.subr.bf16.mxu1 %v1663_v16 }
  0x5f   :  { %1206 = vmatpush2.bf16.msra.mxu0 %v1658_v17 }
  0x60   :  { %1249 = vmatpush2.bf16.msra.mxu1 %v1661_v18  ;;  %1207 = vmatprep.subr.bf16.mxu0 %v1666_v19  ;;  %v1688_v18 = vld [vmem:[#allocation5 + $0x270] ss:$8 sps:$4 sm:$0xff]  }
  0x61   :  { %1250 = vmatprep.subr.bf16.mxu1 %v1669_v20  ;;  %v1691_v19 = vld [vmem:[#allocation5 + $0x370] ss:$8 sps:$4 sm:$0xff]  }
  0x63   :  { %1208 = vmatpush2.bf16.msra.mxu0 %v1664_v21 }
  0x64   :  { %1251 = vmatpush2.bf16.msra.mxu1 %v1667_v22  ;;  %1209 = vmatprep.subr.bf16.mxu0 %v1672_v23 }
  0x65   :  { %1252 = vmatprep.subr.bf16.mxu1 %v1675_v24  ;;  %v1696_v24 = vld [vmem:[#allocation5 + $0x264] ss:$8 sps:$4 sm:$0xff]  }
  0x67   :  { %1210 = vmatpush2.bf16.msra.mxu0 %v1670_v25  ;;  %v1699_v25 = vld [vmem:[#allocation5 + $0x364] ss:$8 sps:$4 sm:$0xff]  }
  0x68   :  { %1253 = vmatpush2.bf16.msra.mxu1 %v1673_v26  ;;  %1211 = vmatprep.subr.bf16.mxu0 %v1678_v27 }
  0x69   :  { %1254 = vmatprep.subr.bf16.mxu1 %v1681_v28 }
  0x6b   :  { %1212 = vmatpush2.bf16.msra.mxu0 %v1676_v29 }
  0x6c   :  { %1255 = vmatpush2.bf16.msra.mxu1 %v1679_v30  ;;  %1213 = vmatprep.subr.bf16.mxu0 %v1684_v31  ;;  %v1694_v30 = vld [vmem:[#allocation5 + $0x260] ss:$8 sps:$4 sm:$0xff]  }
  0x6d   :  { %1256 = vmatprep.subr.bf16.mxu1 %v1687_v32  ;;  %v1697_v31 = vld [vmem:[#allocation5 + $0x360] ss:$8 sps:$4 sm:$0xff]  }
  0x6f   :  { %1214 = vmatpush2.bf16.msra.mxu0 %v1682_v33 }
  0x70   :  { %1257 = vmatpush2.bf16.msra.mxu1 %v1685_v34  ;;  %1269 = vmatprep.subr.bf16.mxu0 %v1690_v35 }
  0x71   :  { %1312 = vmatprep.subr.bf16.mxu1 %v1693_v36  ;;  %v1702_v36 = vld [vmem:[#allocation5 + $0x254] ss:$8 sps:$4 sm:$0xff]  }
  0xea   :  { %v241_v44 = vpop.f32.mrf.mxu0 }
  0xeb   :  { %v284_v45 = vpop.f32.mrf.mxu1  ;;  %v242_v60 = vadd.f32 %v241_v44, %v76_v48 }
  0xec   :  { %v243_v50 = vpop.f32.mrf.mxu0  ;;  %v285_v61 = vadd.f32 %v284_v45, %v84_v49  ;;  %v1700_v45 = vld [vmem:[#allocation5 + $0x250] ss:$8 sps:$4 sm:$0xff]  }
  0xed   :  { %v286_v51 = vpop.f32.mrf.mxu1  ;;  %v244_v56 = vadd.f32 %v243_v50, %v80_v46  ;;  %v379_v12 = vmax.f32 %v242_v60, 0.0  ;;  %v1711_v50 = vld [vmem:[#allocation5 + $0x344] ss:$8 sps:$4 sm:$0xff]   ;;  %v1721_v60 = vld [vmem:[#allocation5 + $0x320] ss:$8 sps:$4 sm:$0xff]  }
  0xee   :  { %v245_v54 = vpop.f32.mrf.mxu0  ;;  %v287_v57 = vadd.f32 %v286_v51, %v88_v47  ;;  %v381_v13 = vmax.f32 %v285_v61, 0.0  ;;  %v1706_v51 = vld [vmem:[#allocation5 + $0x240] ss:$8 sps:$4 sm:$0xff]   ;;  %v1726_v61 = vld [vmem:[#allocation5 + $0x214] ss:$8 sps:$4 sm:$0xff]  }
  0xef   :  { %v288_v55 = vpop.f32.mrf.mxu1  ;;  %v246_v58 = vadd.f32 %v245_v54, %v76_v48  ;;  %v380_v8 = vmax.f32 %v244_v56, 0.0  ;;  %v1717_v54 = vld [vmem:[#allocation5 + $0x334] ss:$8 sps:$4 sm:$0xff]   ;;  %v1715_v56 = vld [vmem:[#allocation5 + $0x330] ss:$8 sps:$4 sm:$0xff]  }
  0xf0   :  { %v289_v59 = vadd.f32 %v288_v55, %v84_v49  ;;  %v247_v62 = vpop.f32.mrf.mxu0  ;;  %v382_v9 = vmax.f32 %v287_v57, 0.0  ;;  %v1708_v49 = vld [vmem:[#allocation5 + $0x244] ss:$8 sps:$4 sm:$0xff]   ;;  %v1712_v55 = vld [vmem:[#allocation5 + $0x230] ss:$8 sps:$4 sm:$0xff]  }
  0xf1   :  { %v290_v63 = vpop.f32.mrf.mxu1  ;;  %v248_v0 = vadd.f32 %v247_v62, %v80_v46  ;;  %v387_v4 = vmax.f32 %v246_v58, 0.0  ;;  %v1703_v46 = vld [vmem:[#allocation5 + $0x350] ss:$8 sps:$4 sm:$0xff]   ;;  %v1720_v57 = vld [vmem:[#allocation5 + $0x224] ss:$8 sps:$4 sm:$0xff]  }
  0xf2   :  { %v291_v1 = vadd.f32 %v290_v63, %v88_v47  ;;  %v389_v5 = vmax.f32 %v289_v59, 0.0  ;;  %v1925_v6 = vpop.f32.mrf.mxu0  ;;  %v1723_v58 = vld [vmem:[#allocation5 + $0x324] ss:$8 sps:$4 sm:$0xff]   ;;  %v1718_v59 = vld [vmem:[#allocation5 + $0x220] ss:$8 sps:$4 sm:$0xff]  }
  0xf3   :  { %v1927_v7 = vpop.f32.mrf.mxu1  ;;  %v388_v10 = vmax.f32 %v248_v0, 0.0  ;;  %v395_v22 = vpack.c.bf16 %v387_v4, %v379_v12  ;;  %v1729_v62 = vld [vmem:[#allocation5 + $0x314] ss:$8 sps:$4 sm:$0xff]   ;;  %v1724_v63 = vld [vmem:[#allocation5 + $0x210] ss:$8 sps:$4 sm:$0xff]  }
  0xf4   :  { %v390_v11 = vmax.f32 %v291_v1, 0.0  ;;  %v329_v14 = vpop.f32.mrf.mxu0  ;;  %v397_v23 = vpack.c.bf16 %v389_v5, %v381_v13  ;;  %v1727_v0 = vld [vmem:[#allocation5 + $0x310] ss:$8 sps:$4 sm:$0xff]   ;;  %v1732_v1 = vld [vmem:[#allocation5 + $0x204] ss:$8 sps:$4 sm:$0xff]  }
  0xf5   :  { %v372_v15 = vpop.f32.mrf.mxu1  ;;  %v396_v16 = vpack.c.bf16 %v388_v10, %v380_v8  ;;  %v330_v20 = vadd.f32 %v329_v14, %v96_v2  ;;  %v1733_v4 = vld [vmem:[#allocation5 + $0x300] ss:$8 sps:$4 sm:$0xff]   ;;  %v1738_v5 = vld [vmem:[#allocation5 + $0x2f4] ss:$8 sps:$4 sm:$0xff]   ;;  %v1739_v10 = vld [vmem:[#allocation5 + $0x3f0] ss:$8 sps:$4 sm:$0xff]  }
  0xf6   :  { %v398_v17 = vpack.c.bf16 %v390_v11, %v382_v9  ;;  %v373_v21 = vadd.f32 %v372_v15, %v104_v3  ;;  %v1929_v26 = vpop.f32.mrf.mxu0  ;;  %v1741_v8 = vld [vmem:[#allocation5 + $0x3f4] ss:$8 sps:$4 sm:$0xff]   ;;  %v1736_v9 = vld [vmem:[#allocation5 + $0x2f0] ss:$8 sps:$4 sm:$0xff]   ;;  %v1744_v11 = vld [vmem:[#allocation5 + $0x2e4] ss:$8 sps:$4 sm:$0xff]  }
  0xf7   :  { %v1931_v27 = vpop.f32.mrf.mxu1  ;;  %1215 = vmatprep.mubr.bf16.mxu0 %v396_v16  ;;  %v384_v32 = vmax.f32 %v330_v20, 0.0  ;;  %v1747_v12 = vld [vmem:[#allocation5 + $0x3e4] ss:$8 sps:$4 sm:$0xff]   ;;  %v1742_v13 = vld [vmem:[#allocation5 + $0x2e0] ss:$8 sps:$4 sm:$0xff]  }
  0xf8   :  { %1258 = vmatprep.mubr.bf16.mxu1 %v398_v17  ;;  %1216 = vmatmul.mubr.bf16.vlgmr.msra.gmra.mxu0 %v395_v22  ;;  %v333_v28 = vpop.f32.mrf.mxu0  ;;  %v386_v33 = vmax.f32 %v373_v21, 0.0  ;;  %v1745_v14 = vld [vmem:[#allocation5 + $0x3e0] ss:$8 sps:$4 sm:$0xff]   ;;  %v1750_v15 = vld [vmem:[#allocation5 + $0x2d4] ss:$8 sps:$4 sm:$0xff]  }
  0xf9   :  { %1259 = vmatmul.mubr.bf16.vlgmr.msra.gmra.mxu1 %v397_v23  ;;  %v376_v29 = vpop.f32.mrf.mxu1  ;;  %1270 = vmatpush1.bf16.msra.mxu0 %v1688_v18  ;;  %v334_v34 = vadd.f32 %v333_v28, %v96_v2  ;;  %v1735_v2 = vld [vmem:[#allocation5 + $0x304] ss:$8 sps:$4 sm:$0xff]   ;;  %v1753_v16 = vld [vmem:[#allocation5 + $0x3d4] ss:$8 sps:$4 sm:$0xff]   ;;  %v1748_v17 = vld [vmem:[#allocation5 + $0x2d0] ss:$8 sps:$4 sm:$0xff]  }
  0xfa   :  { %1313 = vmatpush1.bf16.msra.mxu1 %v1691_v19  ;;  %v377_v35 = vadd.f32 %v376_v29, %v104_v3  ;;  %1271 = vmatprep.subr.bf16.mxu0 %v1696_v24  ;;  %v1730_v3 = vld [vmem:[#allocation5 + $0x200] ss:$8 sps:$4 sm:$0xff]   ;;  %v1751_v18 = vld [vmem:[#allocation5 + $0x3d0] ss:$8 sps:$4 sm:$0xff]   ;;  %v1756_v19 = vld [vmem:[#allocation5 + $0x2c4] ss:$8 sps:$4 sm:$0xff]  }
  0xfb   :  { %1314 = vmatprep.subr.bf16.mxu1 %v1699_v25  ;;  %v392_v42 = vmax.f32 %v334_v34, 0.0  ;;  %v1759_v20 = vld [vmem:[#allocation5 + $0x3c4] ss:$8 sps:$4 sm:$0xff]   ;;  %v1754_v21 = vld [vmem:[#allocation5 + $0x2c0] ss:$8 sps:$4 sm:$0xff]   ;;  %v91_v25 = vsub.s32 4, %v1900_v38 }
  0xfc   :  { %v394_v44 = vmax.f32 %v377_v35, 0.0  ;;  %v1757_v22 = vld [vmem:[#allocation5 + $0x3c0] ss:$8 sps:$4 sm:$0xff]   ;;  %v1762_v23 = vld [vmem:[#allocation5 + $0x2b4] ss:$8 sps:$4 sm:$0xff]  }
  0xfd   :  { %1272 = vmatpush1.bf16.msra.mxu0 %v1694_v30  ;;  %v400_v47 = vpack.c.bf16 %v392_v42, %v384_v32  ;;  %v1765_v24 = vld [vmem:[#allocation5 + $0x3b4] ss:$8 sps:$4 sm:$0xff]   ;;  %v1760_v28 = vld [vmem:[#allocation5 + $0x2b0] ss:$8 sps:$4 sm:$0xff]   ;;  %v99_v30 = vsub.s32 6, %v1900_v38 }
  0xfe   :  { %1315 = vmatpush1.bf16.msra.mxu1 %v1697_v31  ;;  %v402_v48 = vpack.c.bf16 %v394_v44, %v386_v33  ;;  %1273 = vmatprep.subr.bf16.mxu0 %v1702_v36  ;;  %v1763_v29 = vld [vmem:[#allocation5 + $0x3b0] ss:$8 sps:$4 sm:$0xff]   ;;  %v1768_v31 = vld [vmem:[#allocation5 + $0x2a4] ss:$8 sps:$4 sm:$0xff]   ;;  %v92_v33 = vrot.slane %v1913_v43, %v91_v25  ;;  %v1766_v34 = vld [vmem:[#allocation5 + $0x2a0] ss:$8 sps:$4 sm:$0xff]  }
  0xff   :  { %1316 = vmatprep.subr.bf16.mxu1 %v1705_v40  ;;  %1301 = vmatprep.mubr.bf16.mxu0 %v400_v47  ;;  %v1771_v32 = vld [vmem:[#allocation5 + $0x3a4] ss:$8 sps:$4 sm:$0xff]   ;;  %v1769_v35 = vld [vmem:[#allocation5 + $0x3a0] ss:$8 sps:$4 sm:$0xff]   ;;  %v100_v36 = vrot.slane %v1913_v43, %v99_v30  ;;  %v1774_v40 = vld [vmem:[#allocation5 + $0x294] ss:$8 sps:$4 sm:$0xff]  }
 0x100   :  { %1344 = vmatprep.mubr.bf16.mxu1 %v402_v48  ;;  %v1777_v42 = vld [vmem:[#allocation5 + $0x394] ss:$8 sps:$4 sm:$0xff]   ;;  %v328_v44 = vadd.f32 %v1925_v6, %v92_v33  ;;  %v332_v48 = vadd.f32 %v1929_v26, %v92_v33  ;;  %v1783_v43 = vld [vmem:[#allocation5 + $0x384] ss:$8 sps:$4 sm:$0xff]  }
 0x101   :  { %1274 = vmatpush1.bf16.msra.mxu0 %v1700_v45  ;;  %v1772_v45 = vld [vmem:[#allocation5 + $0x290] ss:$8 sps:$4 sm:$0xff]   ;;  %v371_v47 = vadd.f32 %v1927_v7, %v100_v36 }
 0x102   :  { %1317 = vmatpush1.bf16.msra.mxu1 %v1703_v46  ;;  %1275 = vmatprep.subr.bf16.mxu0 %v1708_v49  ;;  %v1775_v46 = vld [vmem:[#allocation5 + $0x390] ss:$8 sps:$4 sm:$0xff]   ;;  %v375_v49 = vadd.f32 %v1931_v27, %v100_v36 }
 0x103   :  { %1318 = vmatprep.subr.bf16.mxu1 %v1711_v50  ;;  %v1780_v50 = vld [vmem:[#allocation5 + $0x284] ss:$8 sps:$4 sm:$0xff]   ;;  %v385_v6 = vmax.f32 %v371_v47, 0.0 }
 0x105   :  { %1276 = vmatpush1.bf16.msra.mxu0 %v1706_v51  ;;  %v1778_v51 = vld [vmem:[#allocation5 + $0x280] ss:$8 sps:$4 sm:$0xff]  }
 0x106   :  { %1319 = vmatpush1.bf16.msra.mxu1 %v1709_v52  ;;  %1277 = vmatprep.subr.bf16.mxu0 %v1714_v53  ;;  %v1781_v52 = vld [vmem:[#allocation5 + $0x380] ss:$8 sps:$4 sm:$0xff]   ;;  %v383_v53 = vmax.f32 %v328_v44, 0.0 }
 0x107   :  { %1320 = vmatprep.subr.bf16.mxu1 %v1717_v54  ;;  %v391_v54 = vmax.f32 %v332_v48, 0.0 }
 0x109   :  { %1278 = vmatpush1.bf16.msra.mxu0 %v1712_v55  ;;  %v393_v55 = vmax.f32 %v375_v49, 0.0  ;;  %v399_v7 = vpack.c.bf16 %v391_v54, %v383_v53 }
 0x10a   :  { %1321 = vmatpush1.bf16.msra.mxu1 %v1715_v56  ;;  %1279 = vmatprep.subr.bf16.mxu0 %v1720_v57  ;;  %v531_v57 = vld [vmem:[%s1961_s4] sm:$0x3] }
 0x10b   :  { %1322 = vmatprep.subr.bf16.mxu1 %v1723_v58  ;;  %v401_v26 = vpack.c.bf16 %v393_v55, %v385_v6 }
 0x10d   :  { %1280 = vmatpush1.bf16.msra.mxu0 %v1718_v59 }
 0x10e   :  { %1323 = vmatpush1.bf16.msra.mxu1 %v1721_v60  ;;  %1281 = vmatprep.subr.bf16.mxu0 %v1726_v61  ;;  %v536_v60 = vrot.slane %v531_v57, %v1907_v41  ;;  %v540_v61 = vrot.slane %v531_v57, %v1903_v39 }
 0x10f   :  { %1324 = vmatprep.subr.bf16.mxu1 %v1729_v62 }
 0x111   :  { %1282 = vmatpush1.bf16.msra.mxu0 %v1724_v63 }
 0x112   :  { %1325 = vmatpush1.bf16.msra.mxu1 %v1727_v0  ;;  %1283 = vmatprep.subr.bf16.mxu0 %v1732_v1 }
 0x113   :  { %1326 = vmatprep.subr.bf16.mxu1 %v1735_v2 }
 0x115   :  { %1284 = vmatpush1.bf16.msra.mxu0 %v1730_v3 }
 0x116   :  { %1327 = vmatpush1.bf16.msra.mxu1 %v1733_v4  ;;  %1285 = vmatprep.subr.bf16.mxu0 %v1738_v5 }
 0x117   :  { %1328 = vmatprep.subr.bf16.mxu1 %v1741_v8 }
 0x119   :  { %1286 = vmatpush2.bf16.msra.mxu0 %v1736_v9 }
 0x11a   :  { %1329 = vmatpush2.bf16.msra.mxu1 %v1739_v10  ;;  %1287 = vmatprep.subr.bf16.mxu0 %v1744_v11 }
 0x11b   :  { %1330 = vmatprep.subr.bf16.mxu1 %v1747_v12 }
 0x11d   :  { %1288 = vmatpush2.bf16.msra.mxu0 %v1742_v13  ;;  %v1359_v13 = vld [vmem:[%s1962_s5] sm:$0x3] }
 0x11e   :  { %1331 = vmatpush2.bf16.msra.mxu1 %v1745_v14  ;;  %1289 = vmatprep.subr.bf16.mxu0 %v1750_v15 }
 0x11f   :  { %1332 = vmatprep.subr.bf16.mxu1 %v1753_v16 }
 0x121   :  { %1290 = vmatpush2.bf16.msra.mxu0 %v1748_v17 }
 0x122   :  { %1333 = vmatpush2.bf16.msra.mxu1 %v1751_v18  ;;  %1291 = vmatprep.subr.bf16.mxu0 %v1756_v19 }
 0x123   :  { %1334 = vmatprep.subr.bf16.mxu1 %v1759_v20 }
 0x125   :  { %1292 = vmatpush2.bf16.msra.mxu0 %v1754_v21  ;;  %v1364_v21 = vrot.slane %v1359_v13, %v1907_v41 }
 0x126   :  { %1335 = vmatpush2.bf16.msra.mxu1 %v1757_v22  ;;  %1293 = vmatprep.subr.bf16.mxu0 %v1762_v23  ;;  %v1368_v22 = vrot.slane %v1359_v13, %v1903_v39  ;;  %v1573_v39 = vld [vmem:[#allocation2] ss:$0 sm:$0xff] }
 0x127   :  { %1336 = vmatprep.subr.bf16.mxu1 %v1765_v24 }
 0x129   :  { %1294 = vmatpush2.bf16.msra.mxu0 %v1760_v28 }
 0x12a   :  { %1337 = vmatpush2.bf16.msra.mxu1 %v1763_v29  ;;  %1295 = vmatprep.subr.bf16.mxu0 %v1768_v31 }
 0x12b   :  { %1338 = vmatprep.subr.bf16.mxu1 %v1771_v32 }
 0x12d   :  { %1296 = vmatpush2.bf16.msra.mxu0 %v1766_v34 }
 0x12e   :  { %1339 = vmatpush2.bf16.msra.mxu1 %v1769_v35  ;;  %1297 = vmatprep.subr.bf16.mxu0 %v1774_v40 }
 0x12f   :  { %1340 = vmatprep.subr.bf16.mxu1 %v1777_v42 }
 0x131   :  { %1298 = vmatpush2.bf16.msra.mxu0 %v1772_v45 }
 0x132   :  { %1341 = vmatpush2.bf16.msra.mxu1 %v1775_v46  ;;  %1299 = vmatprep.subr.bf16.mxu0 %v1780_v50 }
 0x133   :  { %1342 = vmatprep.subr.bf16.mxu1 %v1783_v43  ;;  %v1399_v43 = vand.u32 127, %v73_v37 }
 0x135   :  { %1300 = vmatpush2.bf16.msra.mxu0 %v1778_v51  ;;  %v1404_v51 = vadd.s32 4294967288, %v1399_v43  ;;  %v1402_v53 = vsub.s32 %v1399_v43, %v1900_v38 }
 0x136   :  { %1343 = vmatpush2.bf16.msra.mxu1 %v1781_v52 }
 0x137   :  { %v1407_v6 = vsub.s32 %v1404_v51, %v1900_v38 }
 0x138   :  { %1302 = vmatmul.mubr.bf16.vlgmr.msra.gmra.mxu0 %v399_v7 }
 0x139   :  { %1345 = vmatmul.mubr.bf16.vlgmr.msra.gmra.mxu1 %v401_v26 }
 0x1b8   :  { %v1217_v27 = vpop.f32.mrf.mxu0 }
 0x1b9   :  { %v1260_v56 = vpop.f32.mrf.mxu1  ;;  %v1218_v0 = vadd.f32 %v1217_v27, %v536_v60 }
 0x1ba   :  { %v1219_v58 = vpop.f32.mrf.mxu0 }
 0x1bb   :  { %v1262_v59 = vpop.f32.mrf.mxu1  ;;  %v1220_v1 = vadd.f32 %v1219_v58, %v540_v61  ;;  %v1261_v4 = vadd.f32 %v1260_v56, %v1218_v0 }
 0x1bc   :  { %v1221_v62 = vpop.f32.mrf.mxu0 }
 0x1bd   :  { %v1264_v63 = vpop.f32.mrf.mxu1  ;;  %v1222_v5 = vadd.f32 %v1221_v62, %v536_v60  ;;  %v1263_v10 = vadd.f32 %v1262_v59, %v1220_v1 }
 0x1be   :  { %v1223_v2 = vpop.f32.mrf.mxu0 }
 0x1bf   :  { %v1266_v3 = vpop.f32.mrf.mxu1  ;;  %v1224_v11 = vadd.f32 %v1223_v2, %v540_v61  ;;  %v1265_v16 = vadd.f32 %v1264_v63, %v1222_v5 }
 0x1c1   :  { %v1267_v23 = vadd.f32 %v1266_v3, %v1224_v11 }
 0x1f8   :  { %v1303_v8 = vpop.f32.mrf.mxu0 }
 0x1f9   :  { %v1346_v9 = vpop.f32.mrf.mxu1  ;;  %v1304_v12 = vadd.f32 %v1303_v8, %v1261_v4 }
 0x1fa   :  { %v1305_v14 = vpop.f32.mrf.mxu0 }
 0x1fb   :  { %v1348_v15 = vpop.f32.mrf.mxu1  ;;  %v1347_v17 = vadd.f32 %v1346_v9, %v1304_v12  ;;  %v1306_v18 = vadd.f32 %v1305_v14, %v1263_v10 }
 0x1fc   :  { %v1307_v19 = vpop.f32.mrf.mxu0 }
 0x1fd   :  { %v1350_v20 = vpop.f32.mrf.mxu1  ;;  %v1355_v24 = vmax.f32 %v1347_v17, 0.0  ;;  %v1349_v25 = vadd.f32 %v1348_v15, %v1306_v18  ;;  %v1308_v28 = vadd.f32 %v1307_v19, %v1265_v16 }
 0x1fe   :  { %v1309_v29 = vpop.f32.mrf.mxu0 }
 0x1ff   :  { %v1356_v30 = vmax.f32 %v1349_v25, 0.0  ;;  %v1351_v31 = vadd.f32 %v1350_v20, %v1308_v28  ;;  %v1310_v32 = vadd.f32 %v1309_v29, %v1267_v23  ;;  %v1352_v33 = vpop.f32.mrf.mxu1  ;;  %v1371_v36 = vmul.f32 %v1364_v21, %v1355_v24 }
 0x201   :  { %v1357_v34 = vmax.f32 %v1351_v31, 0.0  ;;  %v1353_v35 = vadd.f32 %v1352_v33, %v1310_v32  ;;  %v1372_v40 = vmul.f32 %v1368_v22, %v1356_v30 }
 0x203   :  { %v1358_v42 = vmax.f32 %v1353_v35, 0.0  ;;  %v1375_v44 = vadd.f32 %v1372_v40, %v1371_v36  ;;  %v1373_v45 = vmul.f32 %v1364_v21, %v1357_v34 }
 0x205   :  { %v1374_v46 = vmul.f32 %v1368_v22, %v1358_v42  ;;  %1376 = vadd.xlane.f32.xlu0 %v1375_v44 }
 0x207   :  { %v1378_v41 = vadd.f32 %v1374_v46, %v1373_v45 }
 0x209   :  { %1379 = vadd.xlane.f32.xlu0 %v1378_v41 }
 0x28e   :  { %v1377_v47 = vpop.xlane.xlu0 %1376 }
 0x28f   :  { %v1388_v48 = vadd.f32 %v1573_v39, %v1377_v47 }
 0x291   :  { %1393 = vperm.xlu1 %1581, %v1388_v48  }
 0x292   :  { %v1380_v49 = vpop.xlane.xlu0 %1379 }
 0x293   :  { %v1389_v50 = vadd.f32 %v1573_v39, %v1380_v49 }
 0x295   :  { %1396 = vperm.xlu1 %1581, %v1389_v50  }
 0x30c   :  { %v1394_v52 = vpop.permute.xlu1 %1393 }
 0x30d   :  { %v1403_v55 = vrot.slane %v1394_v52, %v1402_v53 }
 0x310   :  { %v1397_v54 = vpop.permute.xlu1 %1396 }
 0x311   :  { %v1408_v7 = vrot.slane %v1397_v54, %v1407_v6 }
 0x313   :  { %v1410_v26 = vsel %vm1409_vm2, %v1408_v7, %v1403_v55 }
 0x314   :  { %1413 = vst.msk [vmem:[%s1964_s7] sm:$0x1] %vm1412_vm3, %v1410_v26 }
 0x315   :  { %1418 = vsyncpa [#allocation4], 1 }
 0x316   :  { %1419 = vsyncpa [#allocation6], 1 }

</bundles_post_ra>
